<compile_context>
chip_gen: v6e
topology: v6e:2x2x1
jax: 0.10.0
libtpu: 0.0.40
codegen_flags: <defaults>
</compile_context>

<pallas_src>
import jax
import jax.numpy as jnp
from jax.experimental import pallas as pl
from jax.experimental.pallas import tpu as pltpu

_LANES = 128            # vreg lane width: keep the kernel's last dim lane-dense
_SUBLANES = 8
_TILE_ROWS = 8192       # 8192x128 f32 = 4 MiB tile; in+out double-buffered = 16 MiB
_MIN_GRID_STEPS = 4     # keep >= ~4 pipeline steps so both v7x TCs stay busy
_VMEM_LIMIT = 32 << 20  # explicit scoped-VMEM budget; under physical VMEM on v5e/v6e/v7x
_FUSED_BUDGET = 24 << 20
_INV_SQRT2 = 0.7071067811865476


def _round_up(a, b):
    return (a + b - 1) // b * b


def _affine_gelu(x, w_rs2, b_rs2):
    # gelu(x*w + b) with 1/sqrt(2) pre-folded into (w_rs2, b_rs2):
    #   u = (x*w + b) / sqrt(2);   0.5*(x*w + b) = u / sqrt(2)
    u = x * w_rs2 + b_rs2
    s = u * _INV_SQRT2
    return s * (jax.lax.erf(u) + 1.0)


def _flat_kernel(params_ref, x_ref, o_ref):
    # x_ref: (TM, 128) f32 tile in VMEM; params_ref: (2,) f32 scalars in SMEM.
    o_ref[...] = _affine_gelu(x_ref[...], params_ref[0], params_ref[1])


def _fused_crop_kernel(params_ref, x_ref, o_ref):
    # x_ref: (1, H, W); o_ref: (1, H-2, W-2).  Border crop fused into the kernel.
    h_out = o_ref.shape[1]
    w_out = o_ref.shape[2]
    x = x_ref[...]
    xin = x[0, 1:1 + h_out, 1:1 + w_out]
    o_ref[0] = _affine_gelu(xin, params_ref[0], params_ref[1])


def model_forward(x, weight, bias):
    """x: (N, 1, H, W) float32; weight/bias: scalar ConvTranspose2d(1,1,1) params."""
    x = x.astype(jnp.float32)
    n, c, h, w = x.shape
    assert c == 1, "ConvTranspose2d(1, 1, ...) requires a single input channel"
    assert h > 2 and w > 2, "padding=1 on a 1x1 transposed conv needs spatial dims > 2"
    h_out, w_out = h - 2, w - 2

    # Fold the 1/sqrt(2) factor into the affine parameters once, on the host.
    w_rs2 = jnp.asarray(weight, jnp.float32).reshape(()) * jnp.float32(_INV_SQRT2)
    b_rs2 = jnp.asarray(bias, jnp.float32).reshape(()) * jnp.float32(_INV_SQRT2)
    params = jnp.stack([w_rs2, b_rs2])          # (2,) f32 -> SMEM scalars

    smem_spec = pl.BlockSpec(memory_space=pltpu.MemorySpace.SMEM)
    cparams = pltpu.CompilerParams(
        dimension_semantics=("parallel",),      # shard grid across TCs on v7x
        vmem_limit_bytes=_VMEM_LIMIT,
    )

    # ---- fused-crop path: one HBM read of x, one HBM write of the cropped output.
    fused_bytes = 2 * 4 * (h * w + h_out * w_out)          # double-buffered in + out
    if w_out >= _LANES and fused_bytes <= _FUSED_BUDGET:
        b = n * c
        out3d = pl.pallas_call(
            _fused_crop_kernel,
            out_shape=jax.ShapeDtypeStruct((b, h_out, w_out), jnp.float32),
            grid=(b,),
            in_specs=[smem_spec,
                      pl.BlockSpec((1, h, w), lambda i: (i, 0, 0))],
            out_specs=pl.BlockSpec((1, h_out, w_out), lambda i: (i, 0, 0)),
            compiler_params=cparams,
        )(params, x.reshape(b, h, w))
        return out3d.reshape(n, c, h_out, w_out)

    # ---- flat lane-dense path + post-kernel border crop.
    total = n * c * h * w
    flat = x.reshape(-1)                                   # metadata-only for contiguous x
    padded_total = _round_up(total, _LANES)                # pad only to a lane multiple
    if padded_total != total:
        flat = jnp.pad(flat, (0, padded_total - total))    # <=127 zeros, rare case
    m = padded_total // _LANES
    x2d = flat.reshape(m, _LANES)                          # metadata-only

    if m <= _SUBLANES:
        tm = m                                             # single full block (== full dim)
    else:
        # Aim for >= _MIN_GRID_STEPS grid steps (pipelining + megacore), capped
        # at the 4 MiB tile; tm stays a multiple of 8 so the (8,128) rule holds.
        tm = min(_TILE_ROWS,
                 max(_SUBLANES, _round_up(pl.cdiv(m, _MIN_GRID_STEPS), _SUBLANES)))
    grid = (pl.cdiv(m, tm),)                               # partial tail block is masked

    out2d = pl.pallas_call(
        _flat_kernel,
        out_shape=jax.ShapeDtypeStruct((m, _LANES), jnp.float32),
        grid=grid,
        in_specs=[smem_spec,
                  pl.BlockSpec((tm, _LANES), lambda i: (i, 0))],
        out_specs=pl.BlockSpec((tm, _LANES), lambda i: (i, 0)),
        compiler_params=cparams,
    )(params, x2d)

    full = out2d.reshape(-1)[:total].reshape(n, c, h, w)
    return full[:, :, 1:-1, 1:-1]                          # padding=1 == border crop


def _reference(x, weight, bias):
    v1 = x.astype(jnp.float32) * weight + bias
    v1 = v1[:, :, 1:-1, 1:-1]
    return v1 * 0.5 * (jax.lax.erf(v1 * 0.7071067811865476) + 1.0)


if __name__ == "__main__":
    key = jax.random.PRNGKey(0)
    kw, kb, k1, k2, k3 = jax.random.split(key, 5)

    # ConvTranspose2d(1, 1, 1) has a single scalar weight and a single scalar bias.
    fan_bound = 1.0  # 1/sqrt(fan_in * k * k) with fan_in = 1, k = 1
    weight = jax.random.uniform(kw, (), minval=-fan_bound, maxval=fan_bound)
    bias = jax.random.uniform(kb, (), minval=-fan_bound, maxval=fan_bound)

    tests = [
        jax.random.normal(k1, (2, 1, 16, 16), dtype=jnp.float32),   # flat path, lane-aligned
        jax.random.normal(k2, (3, 1, 19, 21), dtype=jnp.float32),   # flat path, pad + masked tail block
        jax.random.normal(k3, (2, 1, 12, 130), dtype=jnp.float32),  # fused-crop path (W-2 = 128)
    ]
    for xt in tests:
        out = model_forward(xt, weight, bias)
        jax.block_until_ready(out)
        ref = _reference(xt, weight, bias)
        assert out.shape == ref.shape, (out.shape, ref.shape)
        assert jnp.allclose(out, ref, atol=1e-5, rtol=1e-5), \
            float(jnp.max(jnp.abs(out - ref)))

    print("KERNEL_OK")
</pallas_src>

<mosaic_0001>
module attributes {stable_mosaic.version = 11 : i64} {
  func.func @_flat_kernel(%arg0: i32, %arg1: memref<2xf32, #tpu.memory_space<smem>>, %arg2: memref<4x128xf32, #tpu.memory_space<vmem>>, %arg3: memref<4x128xf32, #tpu.memory_space<vmem>>) attributes {dimension_semantics = [#tpu.dimension_semantics<parallel>], iteration_bounds = array<i64: 1>, scalar_prefetch = 0 : i64, scratch_operands = 0 : i64, tpu.core_type = #tpu.core_type<tc>, window_params = [{transform_indices = @transform_0, window_bounds = array<i64: 2>}, {transform_indices = @transform_1, window_bounds = array<i64: 4, 128>}, {transform_indices = @transform_2, window_bounds = array<i64: 4, 128>}]} {
    %c0 = arith.constant 0 : index
    %c0_0 = arith.constant 0 : index
    %0 = vector.load %arg2[%c0, %c0_0] : memref<4x128xf32, #tpu.memory_space<vmem>>, vector<4x128xf32>
    %c0_1 = arith.constant 0 : index
    %1 = memref.load %arg1[%c0_1] : memref<2xf32, #tpu.memory_space<smem>>
    %c1 = arith.constant 1 : index
    %2 = memref.load %arg1[%c1] : memref<2xf32, #tpu.memory_space<smem>>
    %3 = vector.broadcast %1 : f32 to vector<4x128xf32>
    %4 = arith.mulf %0, %3 : vector<4x128xf32>
    %5 = vector.broadcast %2 : f32 to vector<4x128xf32>
    %6 = arith.addf %4, %5 : vector<4x128xf32>
    %cst = arith.constant 0.707106769 : f32
    %7 = vector.broadcast %cst : f32 to vector<4x128xf32>
    %8 = arith.mulf %6, %7 : vector<4x128xf32>
    %9 = math.erf %6 : vector<4x128xf32>
    %cst_2 = arith.constant 1.000000e+00 : f32
    %10 = vector.broadcast %cst_2 : f32 to vector<4x128xf32>
    %11 = arith.addf %9, %10 : vector<4x128xf32>
    %12 = arith.mulf %8, %11 : vector<4x128xf32>
    %c0_3 = arith.constant 0 : index
    %c0_4 = arith.constant 0 : index
    %13 = vector.load %arg3[%c0_3, %c0_4] : memref<4x128xf32, #tpu.memory_space<vmem>>, vector<4x128xf32>
    tpu.vector_store %arg3[%c0_3, %c0_4], %12 {strides = array<i32>} : memref<4x128xf32, #tpu.memory_space<vmem>>, vector<4x128xf32>,
    return
  }
  func.func @transform_0(%arg0: i32) -> i32 {
    %c0_i32 = arith.constant 0 : i32
    %c0_i32_0 = arith.constant 0 : i32
    return %c0_i32 : i32
  }
  func.func @transform_1(%arg0: i32) -> (i32, i32) {
    %c0_i32 = arith.constant 0 : i32
    %c0_i32_0 = arith.constant 0 : i32
    return %arg0, %c0_i32 : i32, i32
  }
  func.func @transform_2(%arg0: i32) -> (i32, i32) {
    %c0_i32 = arith.constant 0 : i32
    %c0_i32_0 = arith.constant 0 : i32
    return %arg0, %c0_i32 : i32, i32
  }
}

</mosaic_0001>

<bundles_post_ra>
// kernel: tpu_custom_call.1
= control target key start
LH: loop header
LB: loop body
LE: loop exit
PB: predicated region body
PF: predicated region fallthrough
CT: control target
= control target key end

     0   :  { %7 = vsyncpa [#allocation5], 0  ;;  %s150_s0 = inlined_call_operand.hbm [shape: f32[2], index: 0, kind: input, shape index: {}]   ;;  %s151_s1 = inlined_call_operand.hbm [shape: f32[4,128], index: 1, kind: input, shape index: {}]   ;;  %s152_s2 = inlined_call_operand.hbm [shape: f32[4,128], index: 2, kind: output, shape index: {}]  }
   0x1   :  { %8 = vsyncpa [#allocation3], 0 }
   0x2   :  { %9 = vsyncpa [#allocation4], 0  ;;  %s123_s9 = smov [#allocation2]   ;;  %s124_s12 = smov [#allocation6]  }
   0x3   :  { %17 = dma.hbm_to_smem %s150_s0, 16, %s123_s9, [#allocation5]  }
   0x4   :  { %s24_s13 = sshll.u32 %s124_s12, 4  ;;  %s25_s13 = int_to_ptr.vmem [resolvable:$true] %s24_s13 }
   0x5   :  { %s85_s14 = scalar_lea.vmem %s25_s13, 64  ;;  %p90_p1 = scmp.lt.s32.totalorder %s25_s13, %s25_s13 }
   0x6   :  { %p86_p0 = scmp.ne.s32.totalorder %s25_s13, %s85_s14  ;;  %p91_p2 = scmp.lt.s32.totalorder %s85_s14, %s85_s14 }
   0x8   :  { %p92_p3 = por %p91_p2, %p90_p1 }
   0xa   :  { %p93_p4 = pnand %p92_p3, %p86_p0 }
   0xc   :  { %96 = shalt.err (!%p93_p4)
}
   0xd   :  { %27 = dma.hbm_to_vmem [thread:$0]  %s151_s1, 64, %s25_s13, [#allocation3]  }
   0xe   :  { %117 = dma.done.wait [#allocation5], 16  }
   0xf   :  { %118 = vsyncadd [#allocation5], 4294967280 }
  0x10   :  { %119 = dma.done.wait [#allocation3], 64  }
  0x11   :  { %120 = vsyncadd [#allocation3], 4294967232 }
  0x12   :  { %34 = sfence }
  0x13   :  { %s36_s0 = sld [smem:[#allocation2]]  ;;  %v35_v0 = vld [vmem:[#allocation6] sm:$0xf]  ;;  %s125_s18 = smov [#allocation7]  }
  0x14   :  { %s63_s17 = sld [smem:[#allocation2 + $0x1]]  ;;  %s53_s19 = sshll.u32 %s125_s18, 4  ;;  %s54_s19 = int_to_ptr.vmem [resolvable:$true] %s53_s19 }
  0x15   :  { %s97_s1 = scalar_lea.vmem %s54_s19, 64  ;;  %p102_p6 = scmp.lt.s32.totalorder %s54_s19, %s54_s19 }
  0x16   :  { %p98_p5 = scmp.ne.s32.totalorder %s54_s19, %s97_s1  ;;  %p103_p7 = scmp.lt.s32.totalorder %s97_s1, %s97_s1 }
  0x18   :  { %p104_p8 = por %p103_p7, %p102_p6 }
  0x19   :  { %v38_v1 = vstv %s36_s0 }
  0x1a   :  { %v39_v2 = vmul.f32 %v38_v1, %v35_v0  ;;  %v40_v3 = vstv %s63_s17  ;;  %p105_p9 = pnand %p104_p8, %p98_p5 }
  0x1c   :  { %v41_v4 = vadd.f32 %v40_v3, %v39_v2 }
  0x1e   :  { %67 = verf.f32 %v41_v4  ;;  %v42_v5 = vmul.f32 0.70710677, %v41_v4 }
  0x2b   :  { %v68_v6 = vpop.eup %67 }
  0x2c   :  { %v44_v7 = vadd.f32 1.0, %v68_v6 }
  0x2e   :  { %v45_v8 = vmul.f32 %v44_v7, %v42_v5 }
  0x30   :  { %46 = vst [vmem:[#allocation7] sm:$0xf] %v45_v8 }
  0x31   :  { %108 = shalt.err (!%p105_p9)
}
  0x32   :  { %56 = dma.vmem_to_hbm [thread:$0]  %s54_s19, 64, %s152_s2, [#allocation4]  }
  0x33   :  { %121 = dma.done.wait [#allocation4], 64  }
  0x34   :  { %122 = vsyncadd [#allocation4], 4294967232 }
  0x35   :  { %60 = vsyncpa [#allocation3], 1 }
  0x36   :  { %61 = vsyncpa [#allocation4], 1 }
  0x37   :  { %62 = vsyncpa [#allocation5], 1 }

</bundles_post_ra>
